<compile_context>
chip_gen: v6e
topology: v6e:2x2x1
jax: 0.10.0
libtpu: 0.0.40
codegen_flags: <defaults>
</compile_context>

<pallas_src>
import functools

import jax
import jax.numpy as jnp
from jax import lax
from jax.experimental import pallas as pl
from jax.experimental.pallas import tpu as pltpu


# ----------------------------------------------------------------------------
# helpers
# ----------------------------------------------------------------------------
def _round_up(x, m):
    return (x + m - 1) // m * m


def _cdiv(a, b):
    return -(-a // b)


def _vmem_capacity_bytes():
    """Physical per-core VMEM; conservative fallback if the query is unavailable."""
    try:
        return int(pltpu.get_tpu_info().vmem_capacity_bytes)
    except Exception:
        return 64 << 20  # v7x per-TensorCore VMEM (smallest of v5e/v6e/v7x)


def _choose_tiles(M, E, V, x_bpe, w_bpe, budget_bytes):
    """Pick (tile_v, tile_k) so the pipelined working set fits the VMEM budget."""
    out_bpe = 4  # f32 logits

    tv = min(_round_up(V, 128), 2048)  # lane-dense, large V tiles
    # Ensure >=2 V tiles when possible so v7x megacore can shard the parallel axis.
    if tv >= 256 and _round_up(V, 128) // tv < 2:
        tv = max(128, (tv // 2 // 128) * 128)

    def working_set(tv_, tk_):
        e = min(tk_, E)
        return (2 * M * e * x_bpe        # x tiles (double-buffered worst case)
                + 2 * tv_ * e * w_bpe    # W tiles (double-buffered)
                + 2 * M * tv_ * out_bpe)  # resident output block (double-buffered)

    tk = E  # untiled reduction by default
    while tv > 128 and working_set(tv, tk) > budget_bytes:
        tv = max(128, (tv // 2 // 128) * 128)

    if working_set(tv, tk) > budget_bytes and E % 128 == 0:
        # K-tile the reduction only with an exact divisor (keeps contraction exact).
        for cand in (2048, 1024, 512, 256, 128):
            if cand < E and E % cand == 0:
                tk = cand
                if working_set(tv, tk) <= budget_bytes:
                    break
    # TODO(synk): for extremely large B*S the resident-x assumption could also
    # exceed VMEM; an M-tiling fallback (re-streaming W) would be needed then.
    return tv, tk, working_set(tv, tk)


# ----------------------------------------------------------------------------
# kernel: one (M, tile_v) output block, accumulated over the K (E) grid axis
#   x_ref : (M, tk)   resident activations (tok_emb + pos_emb)
#   w_ref : (tv, tk)  out_head weight tile, natural nn.Linear (V, E) layout
#   o_ref : (M, tv)   f32 logits block (resident across the K axis)
# ----------------------------------------------------------------------------
def _dummy_gpt_head_kernel(x_ref, w_ref, o_ref):
    partial = lax.dot_general(
        x_ref[...], w_ref[...],
        dimension_numbers=(((1,), (1,)), ((), ())),  # contract the shared E axis
        preferred_element_type=jnp.float32,
    )
    # TODO(synk): benchmark against a one-time offline (E, V) weight transpose if
    # profiles show XLU vxpose pressure from the lane-contracted rhs.

    @pl.when(pl.program_id(1) == 0)
    def _():
        o_ref[...] = partial.astype(o_ref.dtype)

    @pl.when(pl.program_id(1) != 0)
    def _():
        o_ref[...] += partial.astype(o_ref.dtype)


# ----------------------------------------------------------------------------
# one-time weight preparation (outside the per-call hot path)
# ----------------------------------------------------------------------------
def prepare_out_head_weight(out_head_w, compute_dtype=jnp.float32):
    """Cast the lm-head weight once (e.g. to bf16 to halve the dominant HBM
    stream). Keeps the natural (V, E) nn.Linear layout — no transpose, no pad."""
    return jnp.asarray(out_head_w, dtype=compute_dtype)


# ----------------------------------------------------------------------------
# forward
# ----------------------------------------------------------------------------
@functools.partial(jax.jit, static_argnames=("tile_v", "tile_k", "w_buffers"))
def dummy_gpt_forward(in_idx, tok_emb_table, pos_emb_table, out_head_w,
                      *, tile_v=None, tile_k=None, w_buffers=2):
    """Forward pass of DummyGPTModel.

    in_idx:        (B, S)   int32 token ids
    tok_emb_table: (V, E)   float32
    pos_emb_table: (Ctx, E) float32
    out_head_w:    (V, E)   weight from prepare_out_head_weight (f32 or bf16)
    returns logits (B, S, V) float32
    """
    B, S = in_idx.shape
    V, E = out_head_w.shape

    # ---- glue (once, outside the kernel): gather + positional add -----------
    # TODO(synk): nn.Dropout is identity here (eval-mode semantics);
    # DummyTransformersBlock / DummyLayerNorm are identities in the reference.
    x = tok_emb_table[in_idx] + pos_emb_table[:S][None, :, :]   # (B, S, E)
    M = B * S
    compute_dtype = out_head_w.dtype          # weight cast already done offline
    x = x.reshape(M, E).astype(compute_dtype)  # (M, E) — tiny, cast is cheap

    # ---- generation-aware tile / VMEM budget ---------------------------------
    x_bpe = jnp.dtype(compute_dtype).itemsize
    w_bpe = x_bpe
    cap = _vmem_capacity_bytes()
    budget = int(cap * 0.6)                    # headroom for Mosaic internals
    tv_auto, tk_auto, ws = _choose_tiles(M, E, V, x_bpe, w_bpe, budget)
    tv = tile_v if tile_v is not None else tv_auto
    tk = tile_k if tile_k is not None else tk_auto

    num_v = _cdiv(V, tv)    # ragged V handled by masked edge blocks (no pad/slice)
    num_k = _cdiv(E, tk)
    grid = (num_v, num_k)

    vmem_limit = int(min(cap - (4 << 20), max(ws + (8 << 20), 32 << 20)))
    vmem_limit = max(vmem_limit, 16 << 20)

    cost = pl.CostEstimate(
        flops=2 * M * E * V,
        transcendentals=0,
        bytes_accessed=M * E * x_bpe + V * E * w_bpe + M * V * 4,  # W streams once
    )

    w_spec_kwargs = {}
    if w_buffers != 2:  # optional deeper W prefetch (sweepable, esp. on v7x)
        w_spec_kwargs["pipeline_mode"] = pl.Buffered(w_buffers)
    w_spec = pl.BlockSpec((tv, tk), lambda j, k: (j, k), **w_spec_kwargs)

    logits = pl.pallas_call(
        _dummy_gpt_head_kernel,
        out_shape=jax.ShapeDtypeStruct((M, V), jnp.float32),
        grid_spec=pltpu.PrefetchScalarGridSpec(
            num_scalar_prefetch=0,
            grid=grid,
            in_specs=[
                pl.BlockSpec((M, tk), lambda j, k: (0, k)),   # x: fully resident in M
                w_spec,                                       # W: natural (V, E) tiles
            ],
            out_specs=pl.BlockSpec((M, tv), lambda j, k: (0, j)),
        ),
        compiler_params=pltpu.CompilerParams(
            dimension_semantics=("parallel", "arbitrary"),    # V sharded, K reduction
            vmem_limit_bytes=vmem_limit,
        ),
        cost_estimate=cost,
    )(x, out_head_w)

    return logits.reshape(B, S, V)


def _reference_forward(in_idx, tok_emb_table, pos_emb_table, out_head_w):
    # Pure-JAX reference of the PyTorch forward (dropout/blocks/norm = identity).
    S = in_idx.shape[1]
    x = tok_emb_table[in_idx] + pos_emb_table[:S][None, :, :]
    return jnp.einsum("bse,ve->bsv", x, out_head_w)


if __name__ == "__main__":
    # Small config consistent with the module's __init__.
    config = dict(
        vocab_size=256,
        context_length=16,
        emb_dim=32,
        drop_rate=0.1,
        n_layers=2,
    )
    B, S = 2, 8

    key = jax.random.PRNGKey(0)
    k_tok, k_pos, k_out, k_idx = jax.random.split(key, 4)

    tok_emb_table = jax.random.normal(
        k_tok, (config["vocab_size"], config["emb_dim"]), jnp.float32)
    pos_emb_table = jax.random.normal(
        k_pos, (config["context_length"], config["emb_dim"]), jnp.float32)
    out_head_w = jax.random.normal(
        k_out, (config["vocab_size"], config["emb_dim"]), jnp.float32) * 0.02
    in_idx = jax.random.randint(
        k_idx, (B, S), 0, config["vocab_size"], dtype=jnp.int32)

    # One-time weight prep (f32 here so numerics match the reference exactly;
    # pass compute_dtype=jnp.bfloat16 to halve the W HBM stream in production).
    w_prepared = prepare_out_head_weight(out_head_w, jnp.float32)

    logits = dummy_gpt_forward(in_idx, tok_emb_table, pos_emb_table, w_prepared)
    logits = jax.block_until_ready(logits)

    ref = _reference_forward(in_idx, tok_emb_table, pos_emb_table, out_head_w)
    assert logits.shape == (B, S, config["vocab_size"])
    assert jnp.allclose(logits, ref, atol=1e-4, rtol=1e-4)

    print("KERNEL_OK")
</pallas_src>

<mosaic_0001>
module attributes {stable_mosaic.version = 11 : i64} {
  func.func @_dummy_gpt_head_kernel(%arg0: i32, %arg1: i32, %arg2: memref<16x32xf32, #tpu.memory_space<vmem>>, %arg3: memref<128x32xf32, #tpu.memory_space<vmem>>, %arg4: memref<16x128xf32, #tpu.memory_space<vmem>>) attributes {dimension_semantics = [#tpu.dimension_semantics<parallel>, #tpu.dimension_semantics<arbitrary>], iteration_bounds = array<i64: 2, 1>, scalar_prefetch = 0 : i64, scratch_operands = 0 : i64, tpu.core_type = #tpu.core_type<tc>, window_params = [{transform_indices = @transform_0, window_bounds = array<i64: 16, 32>}, {transform_indices = @transform_1, window_bounds = array<i64: 128, 32>}, {transform_indices = @transform_2, window_bounds = array<i64: 16, 128>}]} {
    %c0 = arith.constant 0 : index
    %c0_0 = arith.constant 0 : index
    %0 = vector.load %arg2[%c0, %c0_0] : memref<16x32xf32, #tpu.memory_space<vmem>>, vector<16x32xf32>
    %c0_1 = arith.constant 0 : index
    %c0_2 = arith.constant 0 : index
    %1 = vector.load %arg3[%c0_1, %c0_2] : memref<128x32xf32, #tpu.memory_space<vmem>>, vector<128x32xf32>
    %cst = arith.constant dense<0.000000e+00> : vector<16x128xf32>
    %2 = tpu.matmul %0, %1, %cst {dimension_numbers = #tpu.dot_dimension_numbers<[1], [1], [0], [0], [0, 0, 1, 0], [], []>} : vector<16x32xf32>, vector<128x32xf32>, vector<16x128xf32> -> vector<16x128xf32>
    %c0_i32 = arith.constant 0 : i32
    %3 = arith.cmpi eq, %arg1, %c0_i32 : i32
    %4 = arith.extui %3 : i1 to i32
    %c0_i32_3 = arith.constant 0 : i32
    %5 = arith.cmpi ne, %4, %c0_i32_3 : i32
    scf.if %5 {
      %c0_6 = arith.constant 0 : index
      %c0_7 = arith.constant 0 : index
      %9 = vector.load %arg4[%c0_6, %c0_7] : memref<16x128xf32, #tpu.memory_space<vmem>>, vector<16x128xf32>
      tpu.vector_store %arg4[%c0_6, %c0_7], %2 {strides = array<i32>} : memref<16x128xf32, #tpu.memory_space<vmem>>, vector<16x128xf32>,
    } else {
    }
    %c0_i32_4 = arith.constant 0 : i32
    %6 = arith.cmpi ne, %arg1, %c0_i32_4 : i32
    %7 = arith.extui %6 : i1 to i32
    %c0_i32_5 = arith.constant 0 : i32
    %8 = arith.cmpi ne, %7, %c0_i32_5 : i32
    scf.if %8 {
      %c0_6 = arith.constant 0 : index
      %c0_7 = arith.constant 0 : index
      %9 = vector.load %arg4[%c0_6, %c0_7] : memref<16x128xf32, #tpu.memory_space<vmem>>, vector<16x128xf32>
      %10 = arith.addf %9, %2 : vector<16x128xf32>
      %c0_8 = arith.constant 0 : index
      %c0_9 = arith.constant 0 : index
      %11 = vector.load %arg4[%c0_8, %c0_9] : memref<16x128xf32, #tpu.memory_space<vmem>>, vector<16x128xf32>
      tpu.vector_store %arg4[%c0_8, %c0_9], %10 {strides = array<i32>} : memref<16x128xf32, #tpu.memory_space<vmem>>, vector<16x128xf32>,
    } else {
    }
    return
  }
  func.func @transform_0(%arg0: i32, %arg1: i32) -> (i32, i32) {
    %c0_i32 = arith.constant 0 : i32
    %c0_i32_0 = arith.constant 0 : i32
    return %c0_i32, %arg1 : i32, i32
  }
  func.func @transform_1(%arg0: i32, %arg1: i32) -> (i32, i32) {
    %c0_i32 = arith.constant 0 : i32
    return %arg0, %arg1 : i32, i32
  }
  func.func @transform_2(%arg0: i32, %arg1: i32) -> (i32, i32) {
    %c0_i32 = arith.constant 0 : i32
    %c0_i32_0 = arith.constant 0 : i32
    return %c0_i32, %arg0 : i32, i32
  }
}

</mosaic_0001>

<bundles_post_ra>
// kernel: dummy_gpt_forward.1
= control target key start
LH: loop header
LB: loop body
LE: loop exit
PB: predicated region body
PF: predicated region fallthrough
CT: control target
= control target key end

     0   :  { %7 = vsyncpa [#allocation3], 0  ;;  %s859_s0 = inlined_call_operand.vmem [shape: f32[16,32], index: 0, kind: input, shape index: {}]   ;;  %s860_s1 = inlined_call_operand.vmem [shape: f32[256,32], index: 1, kind: input, shape index: {}]   ;;  %s861_s2 = inlined_call_operand.hbm [shape: f32[16,256], index: 2, kind: output, shape index: {}]  }
   0x1   :  { %9 = vsyncpa [#allocation3 + $0x1], 0  ;;  %s688_s9 = smov 0   ;;  %s690_s10 = smov 0  }
   0x2   :  { %s692_s11 = smov 0   ;;  %s694_s12 = smov 0  }
   0x3   :  { %s696_s13 = smov 0   ;;  %s698_s14 = smov 0  }
   0x4 LB: > { %s449_s15 = sadd.s32 4294967295, %s667_s14   ;;  %s450_s16 = sadd.s32 4294967294, %s667_s14   ;;  %s667_s14 = sphi %s698_s14, %s15_s14   ;;  %s663_s13 = sphi %s696_s13, %s868_s13   ;;  %s659_s12 = sphi %s694_s12, %s867_s12   ;;  %s655_s11 = sphi %s692_s11, %s866_s11   ;;  %s651_s10 = sphi %s690_s10, %s865_s10   ;;  %s647_s9 = sphi %s688_s9, %s864_s9  }
   0x5   : > { %s27_s17 = sadd.s32 1, %s663_s13  ;;  %s88_s18 = sadd.s32 1, %s655_s11 }
   0x6   : > { %p29_p0 = scmp.ge.s32.totalorder %s27_s17, 2  ;;  %p98_p1 = scmp.ne.s32.totalorder %s655_s11, %s651_s10 }
   0x7   : > { %p99_p2 = scmp.eq.s32.totalorder %s449_s15, 1  ;;  %p104_p3 = scmp.ne.s32.totalorder %s651_s10, %s647_s9 }
   0x8   : > { %s870_s17 = smov (%p29_p0, %s27_s17), 0  ;;  %p105_p5 = scmp.eq.s32.totalorder %s450_s16, 1 }
   0x9   : > { %p728_p4 = por %p99_p2, %p98_p1  ;;  %s85_s20 = ssub.s32 %s663_s13, %s870_s17 }
   0xa   : > { %p454_p6 = scmp.ge.s32.totalorder %s667_s14, 1  ;;  %p86_p7 = scmp.eq.s32.totalorder %s85_s20, 0 }
   0xb   : > { %p735_p8 = por %p105_p5, %p104_p3  ;;  %p142_p9 = scmp.lt.s32.totalorder %s667_s14, 3 }
   0xc   : > { %s741_s22 = scalar_select %p86_p7, %s655_s11, %s88_s18  }
   0xd   : > { %p143_p10 = pnand %p454_p6, %p142_p9 }
   0xe   : > { %s456_s23 = sshll.u32 (!%p143_p10), %s659_s12, 4  ;;  %s168_s4 = sand.u32 (!%p143_p10), 1, %s651_s10  }
   0xf   : > { %146 = sbr.rel (%p143_p10) target bundleno = 298 (0x12a), region = 28  ;;  %p176_p11 = scmp.lt.s32.totalorder (!%p143_p10), %s456_s23, 31 }
  0x10   : > { %s455_s5 = sshll.u32 (!%p143_p10), %s168_s4, 4  ;;  %s477_s8 = sshll.u32 (!%p143_p10), %s659_s12, 7 }
  0x11   : > { %s170_s6 = scalar_lea.vmem (!%p143_p10), [#allocation2], %s455_s5  ;;  %s812_s18 = scalar_lea.hbm (!%p143_p10), %s861_s2, %s477_s8 }
  0x12   : > { %s361_s7 = sshll.u32 (!%p143_p10), %s170_s6, 4  ;;  %s814_s20 = scalar_lea.sflag (!%p143_p10), [#allocation3], %s168_s4  ;;  %s807_s7 = int_to_ptr.vmem [resolvable:$true] %s361_s7 }
  0x13   : > { %s669_s12 = smov (!%p143_p10), [#allocation2]  }
  0x14   : > { %vm202_vm0 = vcmask 261120   ;;  %v184_v0 = vld [vmem:[%s859_s0] sm:$0xff]  ;;  %s872_s23 = smov (!%p176_p11, %s456_s23), 31  ;;  %v185_v17 = vld [vmem:[%s859_s0 + $0x8] sm:$0xff]  ;;  %s595_s24 = sshll.u32 %s669_s12, 4  ;;  %s596_s24 = int_to_ptr.vmem [resolvable:$false] %s595_s24 }
  0x15   : > { %530 = vmatprep.mubr.msk.f32.mxu0 %vm202_vm0, %v184_v0  ;;  %s457_s26 = sshll.u32 %s872_s23, 3  ;;  %s591_s23 = scalar_lea.vmem %s807_s7, 256 }
  0x16   : > { %s751_s29 = scalar_lea.vmem %s860_s1, %s457_s26  ;;  %p592_p12 = scmp.ne.s32.totalorder %s807_s7, %s591_s23 }
  0x17   : > { %v201_v1 = vld [vmem:[%s751_s29 + $0x78] sm:$0xff]  ;;  %v200_v2 = vld [vmem:[%s751_s29 + $0x70] sm:$0xff]  ;;  %v199_v3 = vld [vmem:[%s751_s29 + $0x68] sm:$0xff]  ;;  %s597_s25 = scalar_lea.vmem %s596_s24, 512  ;;  %p598_p1 = scmp.lt.s32.totalorder %s807_s7, %s596_s24 }
  0x18   : > { %498 = vmatprep.subr.msk.mxu0 %vm202_vm0, %v201_v1  ;;  %v198_v4 = vld [vmem:[%s751_s29 + $0x60] sm:$0xff]  ;;  %v197_v5 = vld [vmem:[%s751_s29 + $0x58] sm:$0xff]  ;;  %v196_v6 = vld [vmem:[%s751_s29 + $0x50] sm:$0xff]  ;;  %p593_p13 = pnand %p592_p12, %p728_p4  ;;  %p599_p2 = scmp.lt.s32.totalorder %s597_s25, %s591_s23 }
  0x19   : > { %499 = vmatpush3.xpose.msk.msra.mxu0 %vm202_vm0, %v201_v1  ;;  %v195_v7 = vld [vmem:[%s751_s29 + $0x48] sm:$0xff]  ;;  %v194_v8 = vld [vmem:[%s751_s29 + $0x40] sm:$0xff]  ;;  %v193_v9 = vld [vmem:[%s751_s29 + $0x38] sm:$0xff] }
  0x1a   : > { %500 = vmatprep.subr.msk.mxu0 %vm202_vm0, %v200_v2  ;;  %v192_v10 = vld [vmem:[%s751_s29 + $0x30] sm:$0xff]  ;;  %v191_v11 = vld [vmem:[%s751_s29 + $0x28] sm:$0xff]  ;;  %v190_v12 = vld [vmem:[%s751_s29 + $0x20] sm:$0xff]  ;;  %p594_p0 = pneg %p593_p13  ;;  %p600_p3 = por %p599_p2, %p598_p1 }
  0x1b   : > { %v189_v13 = vld [vmem:[%s751_s29 + $0x18] sm:$0xff]  ;;  %v188_v14 = vld [vmem:[%s751_s29 + $0x10] sm:$0xff]  ;;  %v187_v15 = vld [vmem:[%s751_s29 + $0x8] sm:$0xff] }
  0x1c   : > { %v186_v16 = vld [vmem:[%s751_s29] sm:$0xff]  ;;  %p601_p5 = pnand %p600_p3, %p594_p0 }
  0x1d   : > { %501 = vmatpush3.xpose.msk.msra.mxu0 %vm202_vm0, %v200_v2 }
  0x1e   : > { %502 = vmatprep.subr.msk.mxu0 %vm202_vm0, %v199_v3 }
  0x21   : > { %503 = vmatpush3.xpose.msk.msra.mxu0 %vm202_vm0, %v199_v3 }
  0x22   : > { %504 = vmatprep.subr.msk.mxu0 %vm202_vm0, %v198_v4 }
  0x25   : > { %505 = vmatpush3.xpose.msk.msra.mxu0 %vm202_vm0, %v198_v4 }
  0x26   : > { %506 = vmatprep.subr.msk.mxu0 %vm202_vm0, %v197_v5 }
  0x29   : > { %507 = vmatpush3.xpose.msk.msra.mxu0 %vm202_vm0, %v197_v5 }
  0x2a   : > { %508 = vmatprep.subr.msk.mxu0 %vm202_vm0, %v196_v6 }
  0x2d   : > { %509 = vmatpush3.xpose.msk.msra.mxu0 %vm202_vm0, %v196_v6 }
  0x2e   : > { %510 = vmatprep.subr.msk.mxu0 %vm202_vm0, %v195_v7 }
  0x31   : > { %511 = vmatpush3.xpose.msk.msra.mxu0 %vm202_vm0, %v195_v7 }
  0x32   : > { %512 = vmatprep.subr.msk.mxu0 %vm202_vm0, %v194_v8 }
  0x35   : > { %513 = vmatpush3.xpose.msk.msra.mxu0 %vm202_vm0, %v194_v8 }
  0x36   : > { %514 = vmatprep.subr.msk.mxu0 %vm202_vm0, %v193_v9 }
  0x39   : > { %515 = vmatpush3.xpose.msk.msra.mxu0 %vm202_vm0, %v193_v9 }
  0x3a   : > { %516 = vmatprep.subr.msk.mxu0 %vm202_vm0, %v192_v10 }
  0x3d   : > { %517 = vmatpush3.xpose.msk.msra.mxu0 %vm202_vm0, %v192_v10 }
  0x3e   : > { %518 = vmatprep.subr.msk.mxu0 %vm202_vm0, %v191_v11 }
  0x41   : > { %519 = vmatpush3.xpose.msk.msra.mxu0 %vm202_vm0, %v191_v11 }
  0x42   : > { %520 = vmatprep.subr.msk.mxu0 %vm202_vm0, %v190_v12 }
  0x45   : > { %521 = vmatpush3.xpose.msk.msra.mxu0 %vm202_vm0, %v190_v12 }
  0x46   : > { %522 = vmatprep.subr.msk.mxu0 %vm202_vm0, %v189_v13 }
  0x49   : > { %523 = vmatpush3.xpose.msk.msra.mxu0 %vm202_vm0, %v189_v13 }
  0x4a   : > { %524 = vmatprep.subr.msk.mxu0 %vm202_vm0, %v188_v14 }
  0x4d   : > { %525 = vmatpush3.xpose.msk.msra.mxu0 %vm202_vm0, %v188_v14 }
  0x4e   : > { %526 = vmatprep.subr.msk.mxu0 %vm202_vm0, %v187_v15 }
  0x51   : > { %527 = vmatpush3.xpose.msk.msra.mxu0 %vm202_vm0, %v187_v15 }
  0x52   : > { %528 = vmatprep.subr.msk.mxu0 %vm202_vm0, %v186_v16 }
  0x55   : > { %529 = vmatpush3.xpose.msk.msra.mxu0 %vm202_vm0, %v186_v16 }
  0x58   : > { %531 = vmatmul.mubr.msk.f32.vlgmr.msra.gmra.mxu0 %vm202_vm0, %v185_v17 }
 0x118   : > { %v532_v18 = vpop.f32.mrf.mxu0 }
 0x119   : > { %337 = vst [vmem:[%s170_s6 + $0x8] sm:$0xff] %v532_v18 }
 0x11a   : > { %v323_v19 = vpop.f32.mrf.mxu0 }
 0x11b   : > { %336 = vst [vmem:[%s170_s6] sm:$0xff] %v323_v19 }
 0x11c   : > { %604 = shalt.err (!%p601_p5)
}
 0x11d   : > { %s605_s26 = scalar_lea.hbm %s812_s18, 256  ;;  %s609_s29 = scalar_lea.hbm %s861_s2, 512 }
 0x11e   : > { %p606_p6 = scmp.ne.s32.totalorder %s812_s18, %s605_s26  ;;  %p610_p10 = scmp.lt.s32.totalorder %s812_s18, %s861_s2 }
 0x11f   : > { %p611_p11 = scmp.lt.s32.totalorder %s609_s29, %s605_s26 }
 0x120   : > { %p607_p7 = pnand %p606_p6, %p728_p4 }
 0x121   : > { %p612_p12 = por %p611_p11, %p610_p10 }
 0x122   : > { %p608_p9 = pneg %p607_p7 }
 0x124   : > { %p613_p13 = pnand %p612_p12, %p608_p9 }
 0x126   : > { %616 = shalt.err (!%p613_p13)
}
 0x127   : > { %s670_s4 = smov 128   ;;  %s671_s5 = smov 256  }
 0x128   : > { %s672_s6 = smov 8  }
 0x129   : > { %533 = dma.vmem_to_hbm [thread:$0]  (%p728_p4), %s807_s7, 256, %s812_s18, %s814_s20, %s670_s4, %s671_s5, %s672_s6  }
 0x12a PF: > { %p539_p0 = scmp.ge.s32.totalorder %s667_s14, 2  ;;  %s376_s8 = sand.u32 1, %s647_s9  }
 0x12b   : > { %s377_s15 = scalar_lea.sflag [#allocation3], %s376_s8 }
 0x12c   : > { %p536_p1 = pnand %p539_p0, %p735_p8 }
 0x12e   : > { %p537_p2 = pneg %p536_p1 }
 0x130   : > { %642 = dma.done.wait (%p537_p2), %s377_s15, 256  }
 0x131   : > { %644 = vsyncadd (%p537_p2), %s377_s15, 4294967040  ;;  %s15_s14 = sadd.s32 1, %s667_s14   ;;  %s864_s9 = smov %s651_s10 }
 0x132   : > { %p12_p3 = scmp.ge.s32.totalorder %s15_s14, 4   ;;  %s865_s10 = smov %s655_s11 }
 0x133   : > { %s866_s11 = smov %s741_s22  ;;  %s867_s12 = smov %s663_s13 }
 0x134   : > { %s868_s13 = smov %s870_s17  ;;  %14 = sbr.rel (!%p12_p3) target bundleno = 4 (0x4), region = 74 }
 0x139   :  { %382 = vsyncpa [#allocation3], 1 }
 0x13a   :  { %384 = vsyncpa [#allocation3 + $0x1], 1 }

</bundles_post_ra>
